<compile_context>
chip_gen: v7x
topology: tpu7x:2x2x1
jax: 0.10.0
libtpu: 0.0.40
codegen_flags: <defaults>
</compile_context>

<pallas_src>
import jax
import jax.numpy as jnp
from jax.experimental import pallas as pl
from jax.experimental.pallas import tpu as pltpu


def _round_up(x, m):
    return ((x + m - 1) // m) * m


# ----------------------------- Pallas kernel --------------------------------

def _fused_embed_kernel(ids_ref, table_ref, o_ref):
    # ids_ref:   (tm, 1)      int32 token ids for this row tile
    # table_ref: (tv, H_pad)  bf16 tile of the fused (embed @ W.T) table
    # o_ref:     (tm, H_pad)  f32 output tile (resident across the vocab axis)
    j = pl.program_id(1)
    tm = ids_ref.shape[0]
    tv = table_ref.shape[0]

    @pl.when(j == 0)
    def _():
        o_ref[...] = jnp.zeros_like(o_ref)

    ids = ids_ref[...]                                               # (tm, 1)
    local = jax.lax.broadcasted_iota(jnp.int32, (tm, tv), 1)         # (tm, tv)
    # One-hot restricted to this vocab tile; only the tile containing the id
    # contributes, so accumulating across j reproduces the exact gathered row.
    one_hot = (local == (ids - j * tv)).astype(table_ref.dtype)      # (tm, tv)

    # Gather+Linear in one MXU pass (W already folded into the table).
    o_ref[...] += jnp.dot(one_hot, table_ref[...],
                          preferred_element_type=jnp.float32)


def _fused_embed_pallas(ids, fused_pad, *, tv, tm_default=256, pad_id=1):
    """ids: (N,) int32.  fused_pad: (V_pad, H_pad).  Returns (N_pad, H_pad) f32."""
    n = ids.shape[0]
    v_pad, h_pad = fused_pad.shape
    assert v_pad % tv == 0
    n_v = v_pad // tv
    itemsize = jnp.dtype(fused_pad.dtype).itemsize

    # Row tile: sublane-granular (multiple of 8) so tiny inputs don't over-pad.
    # For large N the default tm=256 yields >=2 row tiles once N >= 512, which
    # lets dimension_semantics=("parallel", ...) shard rows across v7x's 2 TCs.
    tm = max(8, min(tm_default, _round_up(n, 8)))
    n_pad = _round_up(n, tm)
    n_rows = n_pad // tm

    ids_col = jnp.pad(ids.reshape(-1, 1).astype(jnp.int32),
                      ((0, n_pad - n), (0, 0)),
                      constant_values=pad_id)          # pad rows sliced off later

    # Table BlockSpec: single-buffer it when it is truly resident (constant
    # index_map); otherwise keep default double-buffering to hide the DMA of
    # the next vocab tile.
    if n_v == 1:
        try:
            table_spec = pl.BlockSpec((tv, h_pad), lambda i, j: (j, 0),
                                      pipeline_mode=pl.Buffered(1))
        except TypeError:  # older BlockSpec without pipeline_mode
            table_spec = pl.BlockSpec((tv, h_pad), lambda i, j: (j, 0))
    else:
        table_spec = pl.BlockSpec((tv, h_pad), lambda i, j: (j, 0))

    # VMEM footprint (inputs/outputs x buffer counts + one-hot/iota temps),
    # with generous headroom, capped well below v7x's 64 MiB physical VMEM.
    table_bufs = 1 if n_v == 1 else 2
    footprint = (tm * 4 * 2                      # ids tile, double-buffered
                 + tv * h_pad * itemsize * table_bufs
                 + tm * h_pad * 4 * 2            # f32 output tile, double-buffered
                 + tm * tv * (4 + itemsize))     # iota + one-hot temporaries
    vmem_limit = int(min(48 * 2**20, max(16 * 2**20, 3 * footprint)))
    try:  # per-generation cap (v7x has only 64 MiB / TC)
        cap = int(0.75 * pltpu.get_tpu_info().vmem_capacity_bytes)
        vmem_limit = min(vmem_limit, max(cap, 8 * 2**20))
    except Exception:
        pass

    cost = pl.CostEstimate(
        flops=2 * n_pad * v_pad * h_pad,
        transcendentals=0,
        bytes_accessed=(n_pad * 4
                        + n_rows * v_pad * h_pad * itemsize
                        + n_pad * h_pad * 4),
    )

    out = pl.pallas_call(
        _fused_embed_kernel,
        out_shape=jax.ShapeDtypeStruct((n_pad, h_pad), jnp.float32),
        grid_spec=pltpu.PrefetchScalarGridSpec(
            num_scalar_prefetch=0,
            grid=(n_rows, n_v),                           # reduction axis last
            in_specs=[
                pl.BlockSpec((tm, 1), lambda i, j: (i, 0)),   # ids row tile
                table_spec,                                   # fused table tile
            ],
            out_specs=pl.BlockSpec((tm, h_pad), lambda i, j: (i, 0)),
        ),
        compiler_params=pltpu.CompilerParams(
            dimension_semantics=("parallel", "arbitrary"),
            vmem_limit_bytes=vmem_limit,
        ),
        cost_estimate=cost,
    )(ids_col, fused_pad)
    return out


# ----------------------------- EmbedEncoder ----------------------------------

class EmbedEncoderPallas:
    def __init__(self, input_size, embedding_dim, hidden_dim, para_init, key,
                 compute_dtype=jnp.bfloat16):
        self.embedding_dim = embedding_dim
        self.hidden_dim = hidden_dim

        k_emb, k_lin = jax.random.split(key)
        # nn.Embedding default init ~ N(0, 1); padding_idx=1 row is zeroed.
        embed = jax.random.normal(k_emb, (input_size, embedding_dim), jnp.float32)
        embed = embed.at[1].set(0.0)
        # nn.Linear weight (hidden_dim, embedding_dim), init N(0, para_init), no bias.
        w = jax.random.normal(k_lin, (hidden_dim, embedding_dim), jnp.float32)
        w = w * para_init

        # f32 master parameters (PyTorch parity).
        self.embed = embed                                  # (V, E)
        self.linear_w = w                                   # (H, E) torch layout

        # Fold the shared bias-free Linear into the table once, in f32.
        fused = jnp.dot(embed, w.T,
                        precision=jax.lax.Precision.HIGHEST)        # (V, H)

        # Kernel-ready padded table: vocab padded to a multiple of the vocab
        # tile tv, hidden padded to 128 for lane-dense stores.
        h_pad = _round_up(hidden_dim, 128)
        tv = min(1024, _round_up(input_size, 128))           # vocab tile size
        v_pad = _round_up(input_size, tv)
        fused_pad = jnp.zeros((v_pad, h_pad), compute_dtype)
        fused_pad = fused_pad.at[:input_size, :hidden_dim].set(
            fused.astype(compute_dtype))
        self.fused_pad = fused_pad                           # (V_pad, H_pad)
        self.tv = tv

    def __call__(self, prem, hypo):
        batch_size = prem.shape[0]
        n_prem = prem.size
        n_hypo = hypo.size

        # Fuse prem + hypo into one kernel launch (table DMA'd once).
        ids = jnp.concatenate([prem.reshape(-1), hypo.reshape(-1)], axis=0)
        out = _fused_embed_pallas(ids, self.fused_pad, tv=self.tv)  # (N_pad, H_pad)
        out = out[: n_prem + n_hypo, : self.hidden_dim]             # single slice

        prem_out = out[:n_prem].reshape(batch_size, -1, self.hidden_dim)
        hypo_out = out[n_prem:].reshape(batch_size, -1, self.hidden_dim)
        return prem_out, hypo_out


# ------------------------------- main ----------------------------------------

if __name__ == "__main__":
    key = jax.random.PRNGKey(0)
    k_params, k_prem, k_hypo = jax.random.split(key, 3)

    # Small shapes consistent with the module's forward.
    vocab_size = 50
    embedding_dim = 32
    hidden_dim = 32
    para_init = 0.01
    batch = 2
    seq_prem = 8
    seq_hypo = 12   # different hypo length; rows need NOT divide the tile

    model = EmbedEncoderPallas(vocab_size, embedding_dim, hidden_dim,
                               para_init, k_params)

    prem = jax.random.randint(k_prem, (batch, seq_prem), 0, vocab_size, jnp.int32)
    hypo = jax.random.randint(k_hypo, (batch, seq_hypo), 0, vocab_size, jnp.int32)

    prem_out, hypo_out = model(prem, hypo)
    jax.block_until_ready((prem_out, hypo_out))

    assert prem_out.shape == (batch, seq_prem, hidden_dim)
    assert hypo_out.shape == (batch, seq_hypo, hidden_dim)

    # (a) Exact check: kernel gather must return the bf16 fused-table rows
    #     bit-for-bit (one-hot selection with f32 accumulation is exact).
    def ref_exact(ids2d):
        f = model.fused_pad[:, :hidden_dim].astype(jnp.float32)
        g = jnp.take(f, ids2d.reshape(-1), axis=0)
        return g.reshape(ids2d.shape[0], -1, hidden_dim)

    assert jnp.allclose(prem_out, ref_exact(prem), atol=1e-6, rtol=1e-6)
    assert jnp.allclose(hypo_out, ref_exact(hypo), atol=1e-6, rtol=1e-6)

    # (b) Parity check vs. the full-f32 module math (embed[ids] @ W.T): only
    #     difference is the single bf16 rounding of the fused table.
    def ref_f32(ids2d):
        e = jnp.take(model.embed, ids2d.reshape(-1), axis=0)
        y = jnp.dot(e, model.linear_w.T, precision=jax.lax.Precision.HIGHEST)
        return y.reshape(ids2d.shape[0], -1, hidden_dim)

    assert jnp.allclose(prem_out, ref_f32(prem), atol=2e-3, rtol=2e-2)
    assert jnp.allclose(hypo_out, ref_f32(hypo), atol=2e-3, rtol=2e-2)

    print("KERNEL_OK")
</pallas_src>

<mosaic_0001>
module attributes {stable_mosaic.version = 11 : i64} {
  func.func @_fused_embed_kernel(%arg0: i32, %arg1: i32, %arg2: memref<40x1xi32, #tpu.memory_space<vmem>>, %arg3: memref<128x128xbf16, #tpu.memory_space<vmem>>, %arg4: memref<40x128xf32, #tpu.memory_space<vmem>>) attributes {dimension_semantics = [#tpu.dimension_semantics<parallel>, #tpu.dimension_semantics<arbitrary>], iteration_bounds = array<i64: 1, 1>, scalar_prefetch = 0 : i64, scratch_operands = 0 : i64, tpu.core_type = #tpu.core_type<tc>, window_params = [{transform_indices = @transform_0, window_bounds = array<i64: 40, 1>}, {pipeline_mode = #tpu.pipeline_mode<synchronous>, transform_indices = @transform_1, window_bounds = array<i64: 128, 128>}, {transform_indices = @transform_2, window_bounds = array<i64: 40, 128>}]} {
    %c0_i32 = arith.constant 0 : i32
    %0 = arith.cmpi eq, %arg1, %c0_i32 : i32
    %1 = arith.extui %0 : i1 to i32
    %c0_i32_0 = arith.constant 0 : i32
    %2 = arith.cmpi ne, %1, %c0_i32_0 : i32
    scf.if %2 {
      %cst_8 = arith.constant 0.000000e+00 : f32
      %18 = vector.broadcast %cst_8 : f32 to vector<40x128xf32>
      %c0_9 = arith.constant 0 : index
      %c0_10 = arith.constant 0 : index
      %19 = vector.load %arg4[%c0_9, %c0_10] : memref<40x128xf32, #tpu.memory_space<vmem>>, vector<40x128xf32>
      tpu.vector_store %arg4[%c0_9, %c0_10], %18 {strides = array<i32>} : memref<40x128xf32, #tpu.memory_space<vmem>>, vector<40x128xf32>,
    } else {
    }
    %c0 = arith.constant 0 : index
    %c0_1 = arith.constant 0 : index
    %3 = vector.load %arg2[%c0, %c0_1] : memref<40x1xi32, #tpu.memory_space<vmem>>, vector<40x1xi32>
    %4 = tpu.iota {dimensions = array<i32: 1>} : vector<40x128xi32>
    %c128_i32 = arith.constant 128 : i32
    %5 = arith.muli %arg1, %c128_i32 : i32
    %6 = vector.broadcast %5 : i32 to vector<40x1xi32>
    %7 = arith.subi %3, %6 : vector<40x1xi32>
    %8 = vector.broadcast %7 : vector<40x1xi32> to vector<40x128xi32>
    %9 = arith.cmpi eq, %4, %8 : vector<40x128xi32>
    %10 = arith.extui %9 : vector<40x128xi1> to vector<40x128xi32>
    %11 = arith.sitofp %10 : vector<40x128xi32> to vector<40x128xf32>
    %12 = arith.truncf %11 : vector<40x128xf32> to vector<40x128xbf16>
    %c0_2 = arith.constant 0 : index
    %c0_3 = arith.constant 0 : index
    %13 = vector.load %arg4[%c0_2, %c0_3] : memref<40x128xf32, #tpu.memory_space<vmem>>, vector<40x128xf32>
    %c0_4 = arith.constant 0 : index
    %c0_5 = arith.constant 0 : index
    %14 = vector.load %arg3[%c0_4, %c0_5] : memref<128x128xbf16, #tpu.memory_space<vmem>>, vector<128x128xbf16>
    %cst = arith.constant dense<0.000000e+00> : vector<40x128xf32>
    %15 = tpu.matmul %12, %14, %cst {dimension_numbers = #tpu.dot_dimension_numbers<[1], [0], [0], [1], [0, 0, 1, 1], [], []>} : vector<40x128xbf16>, vector<128x128xbf16>, vector<40x128xf32> -> vector<40x128xf32>
    %16 = arith.addf %13, %15 : vector<40x128xf32>
    %c0_6 = arith.constant 0 : index
    %c0_7 = arith.constant 0 : index
    %17 = vector.load %arg4[%c0_6, %c0_7] : memref<40x128xf32, #tpu.memory_space<vmem>>, vector<40x128xf32>
    tpu.vector_store %arg4[%c0_6, %c0_7], %16 {strides = array<i32>} : memref<40x128xf32, #tpu.memory_space<vmem>>, vector<40x128xf32>,
    return
  }
  func.func @transform_0(%arg0: i32, %arg1: i32) -> (i32, i32) {
    %c0_i32 = arith.constant 0 : i32
    %c0_i32_0 = arith.constant 0 : i32
    return %arg0, %c0_i32 : i32, i32
  }
  func.func @transform_1(%arg0: i32, %arg1: i32) -> (i32, i32) {
    %c0_i32 = arith.constant 0 : i32
    %c0_i32_0 = arith.constant 0 : i32
    return %arg1, %c0_i32 : i32, i32
  }
  func.func @transform_2(%arg0: i32, %arg1: i32) -> (i32, i32) {
    %c0_i32 = arith.constant 0 : i32
    %c0_i32_0 = arith.constant 0 : i32
    return %arg0, %c0_i32 : i32, i32
  }
}

</mosaic_0001>

<bundles_post_ra>
// kernel: tpu_custom_call.1
= control target key start
LH: loop header
LB: loop body
LE: loop exit
PB: predicated region body
PF: predicated region fallthrough
CT: control target
= control target key end

     0   :  { %7 = vsyncpa [#allocation3], 0  ;;  %s463_s0 = inlined_call_operand.vmem [shape: s32[40,1], index: 0, kind: input, shape index: {}]   ;;  %s464_s1 = inlined_call_operand.hbm [shape: bf16[128,128], index: 1, kind: input, shape index: {}]   ;;  %s465_s2 = inlined_call_operand.hbm [shape: f32[40,128], index: 2, kind: output, shape index: {}]  }
   0x1   :  { %8 = vsyncpa [#allocation4], 0  ;;  %s377_s9 = smov [#allocation2]   ;;  %s329_s13 = scalar_lea.hbm %s464_s1, 1024 }
   0x2   :  { %s16_s10 = sshll.u32 %s377_s9, 4  ;;  %p330_p0 = scmp.ne.s32.totalorder %s464_s1, %s329_s13  ;;  %s17_s10 = int_to_ptr.vmem [resolvable:$true] %s16_s10 }
   0x3   :  { %p333_p1 = scmp.lt.u32.totalorder %s329_s13, %s464_s1 }
   0x5   :  { %p335_p2 = pnand %p333_p1, %p330_p0 }
   0x7   :  { %338 = shalt.err (!%p335_p2)
}
   0x8   :  { %s339_s18 = scalar_lea.vmem %s17_s10, 1024  ;;  %p344_p4 = scmp.lt.s32.totalorder %s17_s10, %s17_s10 }
   0x9   :  { %p340_p3 = scmp.ne.s32.totalorder %s17_s10, %s339_s18  ;;  %p345_p5 = scmp.lt.s32.totalorder %s339_s18, %s339_s18 }
   0xb   :  { %p346_p6 = por %p345_p5, %p344_p4 }
   0xd   :  { %p347_p7 = pnand %p346_p6, %p340_p3 }
   0xf   :  { %350 = shalt.err (!%p347_p7)
}
  0x10   :  { %s378_s19 = smov 64   ;;  %s379_s20 = smov 4  }
  0x11   :  { %22 = dma.hbm_to_vmem [thread:$0]  %s464_s1, 1024, %s17_s10, [#allocation3], %s378_s19, %s378_s19, %s379_s20  }
  0x12   :  { %373 = dma.done.wait [#allocation3], 1024  }
  0x13   :  { %374 = vsyncadd [#allocation3], 4294966272  ;;  %v380_v0 = vmov 0   ;;  %v381_v1 = vmov 0.0   ;;  %v38_v2 = vld [vmem:[%s463_s0 + $0x10] sm:$0xff]  ;;  %v36_v3 = vld [vmem:[%s463_s0] sm:$0xff]  ;;  %v41_v15 = vlaneseq }
  0x14   :  { %320 = vset.pattern.permute.xlu1 %v380_v0  ;;  %319 = vset.pattern.permute.xlu0 %v380_v0  ;;  %v39_v4 = vld [vmem:[%s463_s0 + $0x18] sm:$0xff]  ;;  %v37_v5 = vld [vmem:[%s463_s0 + $0x8] sm:$0xff]  ;;  %v321_v6 = vld [vmem:[#allocation2] sm:$0xff]   ;;  %vm382_vm0 = vmmov 0   ;;  %v383_v21 = vmov 1.0|1.0  }
  0x15   :  { %265 = vmatprep.subr.bf16.mxu0 %v381_v1  ;;  %293 = vmatprep.subr.bf16.mxu1 %v381_v1  ;;  %v322_v7 = vld [vmem:[#allocation2 + $0x8] sm:$0xff]   ;;  %v40_v8 = vld [vmem:[%s463_s0 + $0x20] sm:$0xff]  ;;  %v323_v9 = vld [vmem:[#allocation2 + $0x10] sm:$0xff]   ;;  %v42_v18 = vand.u32 127, %v41_v15  ;;  %s384_s0 = smov [#allocation5]  }
  0x16   :  { %57 = vperm.xlu0 %319, %v38_v2   ;;  %51 = vperm.xlu1 %320, %v36_v3   ;;  %v324_v10 = vld [vmem:[#allocation2 + $0x18] sm:$0xff]   ;;  %v325_v11 = vld [vmem:[#allocation2 + $0x20] sm:$0xff]   ;;  %v326_v12 = vld [vmem:[#allocation2 + $0x28] sm:$0xff]   ;;  %s223_s4 = sshll.u32 %s384_s0, 4  ;;  %s224_s4 = int_to_ptr.vmem [resolvable:$true] %s223_s4 }
  0x17   :  { %266 = vmatpush3.bf16.msra.mxu0 %v321_v6  ;;  %301 = vmatpush3.bf16.msra.mxu1 %v321_v6  ;;  %v327_v13 = vld [vmem:[#allocation2 + $0x30] sm:$0xff]   ;;  %v328_v14 = vld [vmem:[#allocation2 + $0x38] sm:$0xff]   ;;  %s351_s5 = scalar_lea.vmem %s224_s4, 640  ;;  %p356_p9 = scmp.lt.s32.totalorder %s224_s4, %s224_s4 }
  0x18   :  { %267 = vmatprep.subr.bf16.mxu0 %v381_v1  ;;  %294 = vmatprep.subr.bf16.mxu1 %v381_v1  ;;  %p352_p8 = scmp.ne.s32.totalorder %s224_s4, %s351_s5  ;;  %p357_p10 = scmp.lt.s32.totalorder %s351_s5, %s351_s5 }
  0x19   :  { %281 = vmatprep.mubr.msk.bf16.mxu0 %vm382_vm0, %v381_v1  ;;  %285 = vmatprep.mubr.msk.bf16.mxu1 %vm382_vm0, %v381_v1 }
  0x1a   :  { %60 = vperm.xlu0 %319, %v39_v4   ;;  %54 = vperm.xlu1 %320, %v37_v5   ;;  %p358_p11 = por %p357_p10, %p356_p9 }
  0x1b   :  { %268 = vmatpush3.bf16.msra.mxu0 %v322_v7  ;;  %302 = vmatpush3.bf16.msra.mxu1 %v322_v7 }
  0x1c   :  { %269 = vmatprep.subr.bf16.mxu0 %v381_v1  ;;  %295 = vmatprep.subr.bf16.mxu1 %v381_v1  ;;  %p359_p12 = pnand %p358_p11, %p352_p8 }
  0x1e   :  { %63 = vperm.xlu0 %319, %v40_v8  }
  0x1f   :  { %270 = vmatpush3.bf16.msra.mxu0 %v323_v9  ;;  %303 = vmatpush3.bf16.msra.mxu1 %v323_v9 }
  0x20   :  { %271 = vmatprep.subr.bf16.mxu0 %v381_v1  ;;  %296 = vmatprep.subr.bf16.mxu1 %v381_v1 }
  0x23   :  { %272 = vmatpush3.bf16.msra.mxu0 %v324_v10  ;;  %304 = vmatpush3.bf16.msra.mxu1 %v324_v10 }
  0x24   :  { %273 = vmatprep.subr.bf16.mxu0 %v381_v1  ;;  %297 = vmatprep.subr.bf16.mxu1 %v381_v1 }
  0x27   :  { %274 = vmatpush3.bf16.msra.mxu0 %v325_v11  ;;  %305 = vmatpush3.bf16.msra.mxu1 %v325_v11 }
  0x28   :  { %275 = vmatprep.subr.bf16.mxu0 %v381_v1  ;;  %298 = vmatprep.subr.bf16.mxu1 %v381_v1 }
  0x2b   :  { %276 = vmatpush3.bf16.msra.mxu0 %v326_v12  ;;  %306 = vmatpush3.bf16.msra.mxu1 %v326_v12 }
  0x2c   :  { %277 = vmatprep.subr.bf16.mxu0 %v381_v1  ;;  %299 = vmatprep.subr.bf16.mxu1 %v381_v1 }
  0x2f   :  { %278 = vmatpush3.bf16.msra.mxu0 %v327_v13  ;;  %307 = vmatpush3.bf16.msra.mxu1 %v327_v13 }
  0x30   :  { %279 = vmatprep.subr.bf16.mxu0 %v381_v1  ;;  %300 = vmatprep.subr.bf16.mxu1 %v381_v1 }
  0x33   :  { %280 = vmatpush3.bf16.msra.mxu0 %v328_v14  ;;  %308 = vmatpush3.bf16.msra.mxu1 %v328_v14 }
  0x95   :  { %v58_v16 = vpop.permute.xlu0 %57  ;;  %v52_v17 = vpop.permute.xlu1 %51 }
  0x96   :  { %vm65_vm1 = vcmp.eq.s32.totalorder %v42_v18, %v52_v17  ;;  %vm67_vm2 = vcmp.eq.s32.totalorder %v42_v18, %v58_v16 }
  0x99   :  { %v61_v19 = vpop.permute.xlu0 %60  ;;  %v55_v20 = vpop.permute.xlu1 %54 }
  0x9a   :  { %vm68_vm3 = vcmp.eq.s32.totalorder %v42_v18, %v61_v19  ;;  %vm66_vm4 = vcmp.eq.s32.totalorder %v42_v18, %v55_v20 }
  0x9b   :  { %vm250_vm5 = vmpackc.low %vm68_vm3, %vm67_vm2 }
  0x9c   :  { %vm248_vm6 = vmpackc.low %vm66_vm4, %vm65_vm1  ;;  %286 = vmatmul.mubr.msk.bf16.vlgmr.msra.gmra.mrb[0].mxu1 %vm250_vm5, %v383_v21 }
  0x9d   :  { %282 = vmatmul.mubr.msk.bf16.vlgmr.msra.gmra.mrb[0].mxu0 %vm248_vm6, %v383_v21  ;;  %v64_v22 = vpop.permute.xlu0 %63  ;;  %289 = vmatprep.mubr.msk.bf16.mxu1 %vm382_vm0, %v381_v1 }
  0x9e   :  { %vm69_vm7 = vcmp.eq.s32.totalorder %v42_v18, %v64_v22 }
  0x9f   :  { %vm252_vm8 = vmpackc.low %vm69_vm7, %vm69_vm7 }
  0xa4   :  { %290 = vmatmul.mubr.msk.bf16.gmra.mrb[4].mxu1 %vm252_vm8, %v383_v21 }
 0x16f   :  { %v194_v23 = vpop.f32.mrb[0].mxu1 }
 0x170   :  { %v186_v24 = vpop.f32.mrb[0].mxu0  ;;  %v287_v25 = vpop.f32.mrb[1].mxu1  ;;  %215 = vst [vmem:[#allocation5 + $0x10] sm:$0xff] %v194_v23 }
 0x171   :  { %v283_v26 = vpop.f32.mrb[1].mxu0  ;;  %v197_v27 = vpop.f32.mrb[2].mxu1  ;;  %213 = vst [vmem:[#allocation5] sm:$0xff] %v186_v24 }
 0x172   :  { %v189_v28 = vpop.f32.mrb[2].mxu0  ;;  %v288_v29 = vpop.f32.mrb[3].mxu1  ;;  %216 = vst [vmem:[#allocation5 + $0x18] sm:$0xff] %v197_v27 }
 0x173   :  { %v284_v30 = vpop.f32.mrb[3].mxu0  ;;  %214 = vst [vmem:[#allocation5 + $0x8] sm:$0xff] %v189_v28 }
 0x177   :  { %v202_v31 = vpop.f32.mrb[4].mxu1 }
 0x178   :  { %v291_v32 = vpop.f32.mrb[5].mxu1  ;;  %217 = vst [vmem:[#allocation5 + $0x20] sm:$0xff] %v202_v31 }
 0x179   :  { %v205_v33 = vpop.f32.mrb[6].mxu1 }
 0x17a   :  { %v292_v34 = vpop.f32.mrb[7].mxu1 }
 0x17b   :  { %362 = shalt.err (!%p359_p12)
}
 0x17c   :  { %s363_s8 = scalar_lea.hbm %s465_s2, 640 }
 0x17d   :  { %p364_p13 = scmp.ne.s32.totalorder %s465_s2, %s363_s8  ;;  %p367_p0 = scmp.lt.u32.totalorder %s363_s8, %s465_s2 }
 0x17f   :  { %p369_p1 = pnand %p367_p0, %p364_p13 }
 0x181   :  { %372 = shalt.err (!%p369_p1)
}
 0x182   :  { %s385_s13 = smov 128   ;;  %s386_s14 = smov 8  }
 0x183   :  { %229 = dma.vmem_to_hbm [thread:$0]  %s224_s4, 640, %s465_s2, [#allocation4], %s385_s13, %s385_s13, %s386_s14  }
 0x184   :  { %375 = dma.done.wait [#allocation4], 640  }
 0x185   :  { %376 = vsyncadd [#allocation4], 4294966656 }
 0x186   :  { %233 = vsyncpa [#allocation3], 1 }
 0x187   :  { %234 = vsyncpa [#allocation4], 1 }

</bundles_post_ra>
